<compile_context>
chip_gen: v7x
topology: tpu7x:2x2x1
jax: 0.10.0
libtpu: 0.0.40
codegen_flags: <defaults>
</compile_context>

<pallas_src>
import math

import jax
import jax.numpy as jnp
import numpy as np
from jax.experimental import pallas as pl
from jax.experimental.pallas import tpu as pltpu


def _expert_kernel(x_ref, w1_ref, b1_ref, w2_ref, b2_ref, o_ref):
    # fc1: bf16 MXU inputs, f32 accumulation; bias + ReLU in f32.
    x = x_ref[...].astype(jnp.bfloat16)
    h = jnp.dot(x, w1_ref[...], preferred_element_type=jnp.float32)
    h = jnp.maximum(h + b1_ref[...], 0.0)

    # fc2 + ReLU.
    y = jnp.dot(h.astype(jnp.bfloat16), w2_ref[...],
                preferred_element_type=jnp.float32)
    o_ref[...] = jnp.maximum(y + b2_ref[...], 0.0)


def expert_forward(x, params, *, block_rows=None):
    """Fused Expert forward: relu(relu(x @ W1 + b1) @ W2 + b2).

    x: (N, D_IN) float32.  W1/W2 are pre-transposed to (in, out) and stored
    in bf16; biases are (1, d) float32.  Output is float32.
    """
    n, d_in = x.shape
    w1, b1 = params["w1"], params["b1"]
    w2, b2 = params["w2"], params["b2"]
    d_hid = w1.shape[1]
    d_out = w2.shape[1]

    if block_rows is None:
        # Small N: one grid step (single-TC chips pay pure serial overhead per
        # step).  Large N: 256-row blocks fill the v6e/v7x 256x256 MXU (v5e's
        # 128x128 MXU is already full at M=128).
        block_rows = n if n <= 256 else 256
    block_rows = min(block_rows, n)

    grid = (pl.cdiv(n, block_rows),)

    flops = 2 * n * d_in * d_hid + 2 * n * d_hid * d_out + 2 * n * (d_hid + d_out)
    bytes_accessed = (
        x.size * x.dtype.itemsize
        + w1.size * w1.dtype.itemsize
        + w2.size * w2.dtype.itemsize
        + b1.size * b1.dtype.itemsize
        + b2.size * b2.dtype.itemsize
        + n * d_out * 4
    )

    out = pl.pallas_call(
        _expert_kernel,
        out_shape=jax.ShapeDtypeStruct((n, d_out), jnp.float32),
        grid=grid,
        in_specs=[
            pl.BlockSpec((block_rows, d_in), lambda i: (i, 0)),   # x row block
            pl.BlockSpec((d_in, d_hid), lambda i: (0, 0)),        # W1 (resident)
            pl.BlockSpec((1, d_hid), lambda i: (0, 0)),           # b1
            pl.BlockSpec((d_hid, d_out), lambda i: (0, 0)),       # W2 (resident)
            pl.BlockSpec((1, d_out), lambda i: (0, 0)),           # b2
        ],
        out_specs=pl.BlockSpec((block_rows, d_out), lambda i: (i, 0)),
        compiler_params=pltpu.CompilerParams(
            dimension_semantics=("parallel",)),
        cost_estimate=pl.CostEstimate(
            flops=flops, transcendentals=0, bytes_accessed=bytes_accessed),
    )(x, w1, b1, w2, b2)

    return out


def init_params(key, d_in, d_hid, d_out):
    """PyTorch-default Linear init (uniform +-1/sqrt(fan_in)); weights stored
    pre-transposed as (in, out) and cast to bf16 for the MXU; biases f32."""
    k1w, k1b, k2w, k2b = jax.random.split(key, 4)
    bound1 = 1.0 / math.sqrt(d_in)
    bound2 = 1.0 / math.sqrt(d_hid)
    w1 = jax.random.uniform(k1w, (d_in, d_hid), jnp.float32, -bound1, bound1)
    w2 = jax.random.uniform(k2w, (d_hid, d_out), jnp.float32, -bound2, bound2)
    return {
        "w1": w1.astype(jnp.bfloat16),
        "b1": jax.random.uniform(k1b, (1, d_hid), jnp.float32, -bound1, bound1),
        "w2": w2.astype(jnp.bfloat16),
        "b2": jax.random.uniform(k2b, (1, d_out), jnp.float32, -bound2, bound2),
    }


def reference_forward(x, p):
    """Pure-JAX f32 reference of the PyTorch Expert.forward (weights upcast).

    Note: the kernel feeds the MXU bf16 inputs, so results differ from this
    f32 reference by bf16 rounding (~1e-3 relative), well inside tolerance.
    """
    w1 = p["w1"].astype(jnp.float32)
    w2 = p["w2"].astype(jnp.float32)
    h = jnp.maximum(x @ w1 + p["b1"], 0.0)
    return jnp.maximum(h @ w2 + p["b2"], 0.0)


if __name__ == "__main__":
    # Small, TPU-friendly shapes: 64 input rows, 256 -> 512 -> 256 features.
    N, D_IN, D_HID, D_OUT = 64, 256, 512, 256

    key = jax.random.PRNGKey(0)
    k_x, k_p = jax.random.split(key)

    x = jax.random.normal(k_x, (N, D_IN), jnp.float32)
    params = init_params(k_p, D_IN, D_HID, D_OUT)

    out = expert_forward(x, params)
    out = jax.block_until_ready(out)

    ref = reference_forward(x, params)
    assert out.shape == (N, D_OUT)
    np.testing.assert_allclose(np.asarray(out), np.asarray(ref),
                               rtol=2e-2, atol=2e-2)

    print("KERNEL_OK")
</pallas_src>

<mosaic_0001>
module attributes {stable_mosaic.version = 11 : i64} {
  func.func @_expert_kernel(%arg0: i32, %arg1: memref<64x256xf32, #tpu.memory_space<vmem>>, %arg2: memref<256x512xbf16, #tpu.memory_space<vmem>>, %arg3: memref<1x512xf32, #tpu.memory_space<vmem>>, %arg4: memref<512x256xbf16, #tpu.memory_space<vmem>>, %arg5: memref<1x256xf32, #tpu.memory_space<vmem>>, %arg6: memref<64x256xf32, #tpu.memory_space<vmem>>) attributes {dimension_semantics = [#tpu.dimension_semantics<parallel>], iteration_bounds = array<i64: 1>, scalar_prefetch = 0 : i64, scratch_operands = 0 : i64, tpu.core_type = #tpu.core_type<tc>, window_params = [{transform_indices = @transform_0, window_bounds = array<i64: 64, 256>}, {pipeline_mode = #tpu.pipeline_mode<synchronous>, transform_indices = @transform_1, window_bounds = array<i64: 256, 512>}, {pipeline_mode = #tpu.pipeline_mode<synchronous>, transform_indices = @transform_2, window_bounds = array<i64: 1, 512>}, {pipeline_mode = #tpu.pipeline_mode<synchronous>, transform_indices = @transform_3, window_bounds = array<i64: 512, 256>}, {pipeline_mode = #tpu.pipeline_mode<synchronous>, transform_indices = @transform_4, window_bounds = array<i64: 1, 256>}, {transform_indices = @transform_5, window_bounds = array<i64: 64, 256>}]} {
    %c0 = arith.constant 0 : index
    %c0_0 = arith.constant 0 : index
    %0 = vector.load %arg1[%c0, %c0_0] : memref<64x256xf32, #tpu.memory_space<vmem>>, vector<64x256xf32>
    %1 = arith.truncf %0 : vector<64x256xf32> to vector<64x256xbf16>
    %c0_1 = arith.constant 0 : index
    %c0_2 = arith.constant 0 : index
    %2 = vector.load %arg2[%c0_1, %c0_2] : memref<256x512xbf16, #tpu.memory_space<vmem>>, vector<256x512xbf16>
    %cst = arith.constant dense<0.000000e+00> : vector<64x512xf32>
    %3 = tpu.matmul %1, %2, %cst {dimension_numbers = #tpu.dot_dimension_numbers<[1], [0], [0], [1], [0, 0, 1, 1], [], []>} : vector<64x256xbf16>, vector<256x512xbf16>, vector<64x512xf32> -> vector<64x512xf32>
    %c0_3 = arith.constant 0 : index
    %c0_4 = arith.constant 0 : index
    %4 = vector.load %arg3[%c0_3, %c0_4] : memref<1x512xf32, #tpu.memory_space<vmem>>, vector<1x512xf32>
    %5 = vector.broadcast %4 : vector<1x512xf32> to vector<64x512xf32>
    %6 = arith.addf %3, %5 : vector<64x512xf32>
    %cst_5 = arith.constant 0.000000e+00 : f32
    %7 = vector.broadcast %cst_5 : f32 to vector<64x512xf32>
    %8 = arith.maximumf %6, %7 : vector<64x512xf32>
    %9 = arith.truncf %8 : vector<64x512xf32> to vector<64x512xbf16>
    %c0_6 = arith.constant 0 : index
    %c0_7 = arith.constant 0 : index
    %10 = vector.load %arg4[%c0_6, %c0_7] : memref<512x256xbf16, #tpu.memory_space<vmem>>, vector<512x256xbf16>
    %cst_8 = arith.constant dense<0.000000e+00> : vector<64x256xf32>
    %11 = tpu.matmul %9, %10, %cst_8 {dimension_numbers = #tpu.dot_dimension_numbers<[1], [0], [0], [1], [0, 0, 1, 1], [], []>} : vector<64x512xbf16>, vector<512x256xbf16>, vector<64x256xf32> -> vector<64x256xf32>
    %c0_9 = arith.constant 0 : index
    %c0_10 = arith.constant 0 : index
    %12 = vector.load %arg5[%c0_9, %c0_10] : memref<1x256xf32, #tpu.memory_space<vmem>>, vector<1x256xf32>
    %13 = vector.broadcast %12 : vector<1x256xf32> to vector<64x256xf32>
    %14 = arith.addf %11, %13 : vector<64x256xf32>
    %cst_11 = arith.constant 0.000000e+00 : f32
    %15 = vector.broadcast %cst_11 : f32 to vector<64x256xf32>
    %16 = arith.maximumf %14, %15 : vector<64x256xf32>
    %c0_12 = arith.constant 0 : index
    %c0_13 = arith.constant 0 : index
    %17 = vector.load %arg6[%c0_12, %c0_13] : memref<64x256xf32, #tpu.memory_space<vmem>>, vector<64x256xf32>
    tpu.vector_store %arg6[%c0_12, %c0_13], %16 {strides = array<i32>} : memref<64x256xf32, #tpu.memory_space<vmem>>, vector<64x256xf32>,
    return
  }
  func.func @transform_0(%arg0: i32) -> (i32, i32) {
    %c0_i32 = arith.constant 0 : i32
    %c0_i32_0 = arith.constant 0 : i32
    return %arg0, %c0_i32 : i32, i32
  }
  func.func @transform_1(%arg0: i32) -> (i32, i32) {
    %c0_i32 = arith.constant 0 : i32
    %c0_i32_0 = arith.constant 0 : i32
    %c0_i32_1 = arith.constant 0 : i32
    return %c0_i32, %c0_i32_0 : i32, i32
  }
  func.func @transform_2(%arg0: i32) -> (i32, i32) {
    %c0_i32 = arith.constant 0 : i32
    %c0_i32_0 = arith.constant 0 : i32
    %c0_i32_1 = arith.constant 0 : i32
    return %c0_i32, %c0_i32_0 : i32, i32
  }
  func.func @transform_3(%arg0: i32) -> (i32, i32) {
    %c0_i32 = arith.constant 0 : i32
    %c0_i32_0 = arith.constant 0 : i32
    %c0_i32_1 = arith.constant 0 : i32
    return %c0_i32, %c0_i32_0 : i32, i32
  }
  func.func @transform_4(%arg0: i32) -> (i32, i32) {
    %c0_i32 = arith.constant 0 : i32
    %c0_i32_0 = arith.constant 0 : i32
    %c0_i32_1 = arith.constant 0 : i32
    return %c0_i32, %c0_i32_0 : i32, i32
  }
  func.func @transform_5(%arg0: i32) -> (i32, i32) {
    %c0_i32 = arith.constant 0 : i32
    %c0_i32_0 = arith.constant 0 : i32
    return %arg0, %c0_i32 : i32, i32
  }
}

</mosaic_0001>

<bundles_post_ra>
// kernel: tpu_custom_call.1
= control target key start
LH: loop header
LB: loop body
LE: loop exit
PB: predicated region body
PF: predicated region fallthrough
CT: control target
= control target key end

     0   :  { %10 = vsyncpa [#allocation3], 0  ;;  %s1932_s0 = inlined_call_operand.hbm [shape: f32[64,256], index: 0, kind: input, shape index: {}]   ;;  %s1933_s1 = inlined_call_operand.hbm [shape: bf16[256,512], index: 1, kind: input, shape index: {}]   ;;  %s1934_s2 = inlined_call_operand.vmem [shape: f32[1,512], index: 2, kind: input, shape index: {}]   ;;  %s1935_s3 = inlined_call_operand.hbm [shape: bf16[512,256], index: 3, kind: input, shape index: {}]   ;;  %s1936_s4 = inlined_call_operand.vmem [shape: f32[1,256], index: 4, kind: input, shape index: {}]   ;;  %s1937_s5 = inlined_call_operand.hbm [shape: f32[64,256], index: 5, kind: output, shape index: {}]  }
   0x1   :  { %11 = vsyncpa [#allocation6], 0 }
   0x2   :  { %12 = vsyncpa [#allocation4], 0  ;;  %s1732_s18 = smov [#allocation5]   ;;  %s1733_s20 = smov [#allocation2]  }
   0x3   :  { %s30_s19 = sshll.u32 %s1732_s18, 4  ;;  %s18_s21 = sshll.u32 %s1733_s20, 4  ;;  %s31_s19 = int_to_ptr.vmem [resolvable:$true] %s30_s19  ;;  %s1770_s21 = int_to_ptr.vmem [resolvable:$true] %s18_s21 }
   0x4   :  { %s1638_s24 = scalar_lea.hbm %s1933_s1, 8192 }
   0x5   :  { %p1639_p0 = scmp.ne.s32.totalorder %s1933_s1, %s1638_s24  ;;  %p1642_p1 = scmp.lt.u32.totalorder %s1638_s24, %s1933_s1 }
   0x7   :  { %p1644_p2 = pnand %p1642_p1, %p1639_p0 }
   0x9   :  { %1647 = shalt.err (!%p1644_p2)
}
   0xa   :  { %s1648_s29 = scalar_lea.vmem %s31_s19, 8192  ;;  %p1653_p4 = scmp.lt.s32.totalorder %s31_s19, %s31_s19 }
   0xb   :  { %p1649_p3 = scmp.ne.s32.totalorder %s31_s19, %s1648_s29  ;;  %p1654_p5 = scmp.lt.s32.totalorder %s1648_s29, %s1648_s29 }
   0xd   :  { %p1655_p6 = por %p1654_p5, %p1653_p4 }
   0xf   :  { %p1656_p7 = pnand %p1655_p6, %p1649_p3 }
  0x11   :  { %1659 = shalt.err (!%p1656_p7)
}
  0x12   :  { %s1734_s30 = smov 256   ;;  %s1735_s6 = smov 16  }
  0x13   :  { %36 = dma.hbm_to_vmem [thread:$0]  %s1933_s1, 8192, %s31_s19, [#allocation6], %s1734_s30, %s1734_s30, %s1735_s6  }
  0x14   :  { %s1660_s11 = scalar_lea.hbm %s1932_s0, 2048 }
  0x15   :  { %p1661_p8 = scmp.ne.s32.totalorder %s1932_s0, %s1660_s11  ;;  %p1664_p9 = scmp.lt.u32.totalorder %s1660_s11, %s1932_s0 }
  0x17   :  { %p1666_p10 = pnand %p1664_p9, %p1661_p8 }
  0x19   :  { %1669 = shalt.err (!%p1666_p10)
}
  0x1a   :  { %s1670_s16 = scalar_lea.vmem %s1770_s21, 2048  ;;  %p1675_p12 = scmp.lt.s32.totalorder %s1770_s21, %s1770_s21 }
  0x1b   :  { %p1671_p11 = scmp.ne.s32.totalorder %s1770_s21, %s1670_s16  ;;  %p1676_p13 = scmp.lt.s32.totalorder %s1670_s16, %s1670_s16 }
  0x1d   :  { %p1677_p0 = por %p1676_p13, %p1675_p12 }
  0x1f   :  { %p1678_p1 = pnand %p1677_p0, %p1671_p11 }
  0x21   :  { %1681 = shalt.err (!%p1678_p1)
}
  0x22   :  { %24 = dma.hbm_to_vmem [thread:$0]  %s1932_s0, 2048, %s1770_s21, [#allocation3], %s1734_s30, %s1734_s30, %s1735_s6  }
  0x23   :  { %s1736_s18 = smov [#allocation7]   ;;  %s1682_s23 = scalar_lea.hbm %s1935_s3, 8192 }
  0x24   :  { %s44_s19 = sshll.u32 %s1736_s18, 4  ;;  %p1683_p2 = scmp.ne.s32.totalorder %s1935_s3, %s1682_s23  ;;  %s45_s19 = int_to_ptr.vmem [resolvable:$true] %s44_s19 }
  0x25   :  { %p1686_p3 = scmp.lt.u32.totalorder %s1682_s23, %s1935_s3 }
  0x27   :  { %p1688_p4 = pnand %p1686_p3, %p1683_p2 }
  0x29   :  { %1691 = shalt.err (!%p1688_p4)
}
  0x2a   :  { %s1692_s28 = scalar_lea.vmem %s45_s19, 8192  ;;  %p1697_p6 = scmp.lt.s32.totalorder %s45_s19, %s45_s19 }
  0x2b   :  { %p1693_p5 = scmp.ne.s32.totalorder %s45_s19, %s1692_s28  ;;  %p1698_p7 = scmp.lt.s32.totalorder %s1692_s28, %s1692_s28 }
  0x2d   :  { %p1699_p8 = por %p1698_p7, %p1697_p6 }
  0x2f   :  { %p1700_p9 = pnand %p1699_p8, %p1693_p5 }
  0x31   :  { %1703 = shalt.err (!%p1700_p9)
}
  0x32   :  { %s1737_s0 = smov 128   ;;  %s1738_s21 = smov 8  }
  0x33   :  { %50 = dma.hbm_to_vmem [thread:$0]  %s1935_s3, 8192, %s45_s19, [#allocation6], %s1737_s0, %s1737_s0, %s1738_s21  }
  0x34   :  { %1726 = dma.done.wait [#allocation3], 2048  }
  0x35   :  { %1727 = vsyncadd [#allocation3], 4294965248 }
  0x36   :  { %1728 = dma.done.wait [#allocation6], 16384  }
  0x37   :  { %1729 = vsyncadd [#allocation6], 4294950912  ;;  %v1446_v0 = vld [vmem:[#allocation5 + $0x4] ss:$16 sps:$4 sm:$0xff]   ;;  %v1448_v1 = vld [vmem:[#allocation5] ss:$16 sps:$4 sm:$0xff]  }
  0x38   :  { %492 = vmatprep.subr.bf16.mxu1 %v1446_v0  ;;  %v1449_v2 = vld [vmem:[#allocation5 + $0x24] ss:$16 sps:$4 sm:$0xff]   ;;  %v1451_v3 = vld [vmem:[#allocation5 + $0x20] ss:$16 sps:$4 sm:$0xff]   ;;  %v63_v13 = vld [vmem:[#allocation2 + $0x8] sm:$0xff] }
  0x39   :  { %493 = vmatpush1.bf16.msra.mxu1 %v1448_v1  ;;  %v1452_v4 = vld [vmem:[#allocation5 + $0x44] ss:$16 sps:$4 sm:$0xff]   ;;  %v1454_v5 = vld [vmem:[#allocation5 + $0x40] ss:$16 sps:$4 sm:$0xff]   ;;  %v65_v14 = vld [vmem:[#allocation2 + $0x18] sm:$0xff] }
  0x3a   :  { %494 = vmatprep.subr.bf16.mxu1 %v1449_v2  ;;  %v1455_v6 = vld [vmem:[#allocation5 + $0x64] ss:$16 sps:$4 sm:$0xff]   ;;  %v1457_v7 = vld [vmem:[#allocation5 + $0x60] ss:$16 sps:$4 sm:$0xff]   ;;  %v1819_v15 = vpack.c.bf16 %v65_v14, %v63_v13  ;;  %v1496_v44 = vld [vmem:[#allocation5 + $0xc] ss:$16 sps:$4 sm:$0xff]  }
  0x3b   :  { %v1458_v8 = vld [vmem:[#allocation5 + $0x84] ss:$16 sps:$4 sm:$0xff]   ;;  %v1460_v9 = vld [vmem:[#allocation5 + $0x80] ss:$16 sps:$4 sm:$0xff]   ;;  %v67_v45 = vld [vmem:[#allocation2 + $0x28] sm:$0xff] }
  0x3c   :  { %v1461_v10 = vld [vmem:[#allocation5 + $0xa4] ss:$16 sps:$4 sm:$0xff]   ;;  %v1463_v11 = vld [vmem:[#allocation5 + $0xa0] ss:$16 sps:$4 sm:$0xff]   ;;  %524 = vmatprep.mubr.bf16.mxu1 %v1819_v15  ;;  %v69_v46 = vld [vmem:[#allocation2 + $0x38] sm:$0xff] }
  0x3d   :  { %495 = vmatpush1.bf16.msra.mxu1 %v1451_v3  ;;  %v1464_v12 = vld [vmem:[#allocation5 + $0xc4] ss:$16 sps:$4 sm:$0xff]   ;;  %v1466_v16 = vld [vmem:[#allocation5 + $0xc0] ss:$16 sps:$4 sm:$0xff]   ;;  %v1494_v50 = vld [vmem:[#allocation5 + $0x8] ss:$16 sps:$4 sm:$0xff]   ;;  %v1824_v52 = vpack.c.bf16 %v69_v46, %v67_v45 }
  0x3e   :  { %496 = vmatprep.subr.bf16.mxu1 %v1452_v4  ;;  %v1467_v17 = vld [vmem:[#allocation5 + $0xe4] ss:$16 sps:$4 sm:$0xff]   ;;  %v1469_v18 = vld [vmem:[#allocation5 + $0xe0] ss:$16 sps:$4 sm:$0xff]   ;;  %v1499_v51 = vld [vmem:[#allocation5 + $0x2c] ss:$16 sps:$4 sm:$0xff]  }
  0x3f   :  { %v1470_v19 = vld [vmem:[#allocation5 + $0x104] ss:$16 sps:$4 sm:$0xff]   ;;  %v1472_v20 = vld [vmem:[#allocation5 + $0x100] ss:$16 sps:$4 sm:$0xff]   ;;  %v1497_v54 = vld [vmem:[#allocation5 + $0x28] ss:$16 sps:$4 sm:$0xff]  }
  0x40   :  { %v1473_v21 = vld [vmem:[#allocation5 + $0x124] ss:$16 sps:$4 sm:$0xff]   ;;  %v1475_v22 = vld [vmem:[#allocation5 + $0x120] ss:$16 sps:$4 sm:$0xff]   ;;  %v1502_v58 = vld [vmem:[#allocation5 + $0x4c] ss:$16 sps:$4 sm:$0xff]  }
  0x41   :  { %497 = vmatpush1.bf16.msra.mxu1 %v1454_v5  ;;  %v1476_v23 = vld [vmem:[#allocation5 + $0x144] ss:$16 sps:$4 sm:$0xff]   ;;  %v1478_v24 = vld [vmem:[#allocation5 + $0x140] ss:$16 sps:$4 sm:$0xff]   ;;  %v71_v59 = vld [vmem:[#allocation2 + $0x48] sm:$0xff] }
  0x42   :  { %498 = vmatprep.subr.bf16.mxu1 %v1455_v6  ;;  %v1479_v25 = vld [vmem:[#allocation5 + $0x164] ss:$16 sps:$4 sm:$0xff]   ;;  %v1481_v26 = vld [vmem:[#allocation5 + $0x160] ss:$16 sps:$4 sm:$0xff]   ;;  %v73_v60 = vld [vmem:[#allocation2 + $0x58] sm:$0xff] }
  0x43   :  { %v1482_v27 = vld [vmem:[#allocation5 + $0x184] ss:$16 sps:$4 sm:$0xff]   ;;  %v1484_v28 = vld [vmem:[#allocation5 + $0x180] ss:$16 sps:$4 sm:$0xff]   ;;  %v1500_v63 = vld [vmem:[#allocation5 + $0x48] ss:$16 sps:$4 sm:$0xff]   ;;  %v1830_v3 = vpack.c.bf16 %v73_v60, %v71_v59 }
  0x44   :  { %v1485_v29 = vld [vmem:[#allocation5 + $0x1a4] ss:$16 sps:$4 sm:$0xff]   ;;  %v1544_v31 = vld [vmem:[#allocation7] ss:$8 sps:$4 sm:$0xff]   ;;  %v1547_v35 = vld [vmem:[#allocation7 + $0x10] ss:$8 sps:$4 sm:$0xff]  }
  0x45   :  { %499 = vmatpush1.bf16.msra.mxu1 %v1457_v7  ;;  %v1542_v30 = vld [vmem:[#allocation7 + $0x4] ss:$8 sps:$4 sm:$0xff]   ;;  %v1487_v32 = vld [vmem:[#allocation5 + $0x1a0] ss:$16 sps:$4 sm:$0xff]   ;;  %v1545_v33 = vld [vmem:[#allocation7 + $0x14] ss:$8 sps:$4 sm:$0xff]  }
  0x46   :  { %500 = vmatprep.subr.bf16.mxu1 %v1458_v8  ;;  %1082 = vmatprep.subr.bf16.mxu0 %v1542_v30  ;;  %v1488_v34 = vld [vmem:[#allocation5 + $0x1c4] ss:$16 sps:$4 sm:$0xff]   ;;  %v1490_v37 = vld [vmem:[#allocation5 + $0x1c0] ss:$16 sps:$4 sm:$0xff]   ;;  %v1505_v0 = vld [vmem:[#allocation5 + $0x6c] ss:$16 sps:$4 sm:$0xff]  }
  0x47   :  { %1083 = vmatpush1.bf16.msra.mxu0 %v1544_v31  ;;  %v1548_v36 = vld [vmem:[#allocation7 + $0x24] ss:$8 sps:$4 sm:$0xff]   ;;  %v1550_v39 = vld [vmem:[#allocation7 + $0x20] ss:$8 sps:$4 sm:$0xff]   ;;  %v1551_v40 = vld [vmem:[#allocation7 + $0x34] ss:$8 sps:$4 sm:$0xff]  }
  0x48   :  { %1084 = vmatprep.subr.bf16.mxu0 %v1545_v33  ;;  %v1491_v38 = vld [vmem:[#allocation5 + $0x1e4] ss:$16 sps:$4 sm:$0xff]   ;;  %v1493_v41 = vld [vmem:[#allocation5 + $0x1e0] ss:$16 sps:$4 sm:$0xff]   ;;  %v1503_v5 = vld [vmem:[#allocation5 + $0x68] ss:$16 sps:$4 sm:$0xff]  }
  0x49   :  { %501 = vmatpush1.bf16.msra.mxu1 %v1460_v9  ;;  %v62_v42 = vld [vmem:[#allocation2] sm:$0xff]  ;;  %v64_v43 = vld [vmem:[#allocation2 + $0x10] sm:$0xff]  ;;  %v1508_v8 = vld [vmem:[#allocation5 + $0x8c] ss:$16 sps:$4 sm:$0xff]  }
  0x4a   :  { %502 = vmatprep.subr.bf16.mxu1 %v1461_v10  ;;  %v1553_v47 = vld [vmem:[#allocation7 + $0x30] ss:$8 sps:$4 sm:$0xff]   ;;  %v1554_v48 = vld [vmem:[#allocation7 + $0x44] ss:$8 sps:$4 sm:$0xff]   ;;  %v1822_v49 = vpack.c.bf16 %v64_v43, %v62_v42  ;;  %v1556_v53 = vld [vmem:[#allocation7 + $0x40] ss:$8 sps:$4 sm:$0xff]  }
  0x4b   :  { %1085 = vmatpush1.bf16.msra.mxu0 %v1547_v35  ;;  %v66_v55 = vld [vmem:[#allocation2 + $0x20] sm:$0xff]  ;;  %v68_v56 = vld [vmem:[#allocation2 + $0x30] sm:$0xff]  ;;  %v75_v9 = vld [vmem:[#allocation2 + $0x68] sm:$0xff] }
  0x4c   :  { %1086 = vmatprep.subr.bf16.mxu0 %v1548_v36  ;;  %v1557_v57 = vld [vmem:[#allocation7 + $0x54] ss:$8 sps:$4 sm:$0xff]   ;;  %v1559_v61 = vld [vmem:[#allocation7 + $0x50] ss:$8 sps:$4 sm:$0xff]   ;;  %v1560_v62 = vld [vmem:[#allocation7 + $0x64] ss:$8 sps:$4 sm:$0xff]   ;;  %v1828_v1 = vpack.c.bf16 %v68_v56, %v66_v55 }
  0x4d   :  { %503 = vmatpush1.bf16.msra.mxu1 %v1463_v11  ;;  %v1562_v2 = vld [vmem:[#allocation7 + $0x60] ss:$8 sps:$4 sm:$0xff]   ;;  %v1563_v4 = vld [vmem:[#allocation7 + $0x74] ss:$8 sps:$4 sm:$0xff]   ;;  %v1565_v11 = vld [vmem:[#allocation7 + $0x70] ss:$8 sps:$4 sm:$0xff]  }
  0x4e   :  { %504 = vmatprep.subr.bf16.mxu1 %v1464_v12  ;;  %v70_v6 = vld [vmem:[#allocation2 + $0x40] sm:$0xff]  ;;  %v72_v7 = vld [vmem:[#allocation2 + $0x50] sm:$0xff]  ;;  %v77_v10 = vld [vmem:[#allocation2 + $0x78] sm:$0xff] }
  0x4f   :  { %1087 = vmatpush1.bf16.msra.mxu0 %v1550_v39  ;;  %v1566_v12 = vld [vmem:[#allocation7 + $0x84] ss:$8 sps:$4 sm:$0xff]   ;;  %v1834_v13 = vpack.c.bf16 %v72_v7, %v70_v6  ;;  %v1506_v14 = vld [vmem:[#allocation5 + $0x88] ss:$16 sps:$4 sm:$0xff]   ;;  %v1575_v30 = vld [vmem:[#allocation7 + $0xb4] ss:$8 sps:$4 sm:$0xff]  }
  0x50   :  { %1088 = vmatprep.subr.bf16.mxu0 %v1551_v40  ;;  %v1515_v31 = vld [vmem:[#allocation5 + $0xe8] ss:$16 sps:$4 sm:$0xff]   ;;  %v1523_v36 = vld [vmem:[#allocation5 + $0x12c] ss:$16 sps:$4 sm:$0xff]   ;;  %v1857_v60 = vld [vmem:[%s1934_s2] sm:$0xf] }
  0x51   :  { %505 = vmatpush1.bf16.msra.mxu1 %v1466_v16  ;;  %v1836_v16 = vpack.c.bf16 %v77_v10, %v75_v9  ;;  %v1577_v33 = vld [vmem:[#allocation7 + $0xb0] ss:$8 sps:$4 sm:$0xff]   ;;  %v1526_v40 = vld [vmem:[#allocation5 + $0x14c] ss:$16 sps:$4 sm:$0xff]   ;;  %v1586_v55 = vld [vmem:[#allocation7 + $0xe0] ss:$8 sps:$4 sm:$0xff]  }
  0x52   :  { %506 = vmatprep.subr.bf16.mxu1 %v1467_v17  ;;  %v1511_v17 = vld [vmem:[#allocation5 + $0xac] ss:$16 sps:$4 sm:$0xff]   ;;  %v1518_v35 = vld [vmem:[#allocation5 + $0x108] ss:$16 sps:$4 sm:$0xff]  }
  0x53   :  { %1089 = vmatpush1.bf16.msra.mxu0 %v1553_v47  ;;  %v1521_v39 = vld [vmem:[#allocation5 + $0x128] ss:$16 sps:$4 sm:$0xff]   ;;  %v1532_v43 = vld [vmem:[#allocation5 + $0x18c] ss:$16 sps:$4 sm:$0xff]  }
  0x54   :  { %1090 = vmatprep.subr.bf16.mxu0 %v1554_v48  ;;  %v1527_v42 = vld [vmem:[#allocation5 + $0x168] ss:$16 sps:$4 sm:$0xff]   ;;  %v1535_v45 = vld [vmem:[#allocation5 + $0x1ac] ss:$16 sps:$4 sm:$0xff]  }
  0x55   :  { %507 = vmatpush1.bf16.msra.mxu1 %v1469_v18  ;;  %v1568_v18 = vld [vmem:[#allocation7 + $0x80] ss:$8 sps:$4 sm:$0xff]   ;;  %v1538_v47 = vld [vmem:[#allocation5 + $0x1cc] ss:$16 sps:$4 sm:$0xff]  }
  0x56   :  { %508 = vmatprep.subr.bf16.mxu1 %v1470_v19  ;;  %v1569_v19 = vld [vmem:[#allocation7 + $0x94] ss:$8 sps:$4 sm:$0xff]   ;;  %v1533_v46 = vld [vmem:[#allocation5 + $0x1a8] ss:$16 sps:$4 sm:$0xff]  }
  0x57   :  { %1091 = vmatpush1.bf16.msra.mxu0 %v1556_v53  ;;  %v1536_v48 = vld [vmem:[#allocation5 + $0x1c8] ss:$16 sps:$4 sm:$0xff]   ;;  %v1587_v56 = vld [vmem:[#allocation7 + $0xf4] ss:$8 sps:$4 sm:$0xff]  }
  0x58   :  { %1092 = vmatprep.subr.bf16.mxu0 %v1557_v57  ;;  %v1583_v53 = vld [vmem:[#allocation7 + $0xd0] ss:$8 sps:$4 sm:$0xff]   ;;  %v152_v57 = vlaneseq }
  0x59   :  { %509 = vmatpush1.bf16.msra.mxu1 %v1472_v20  ;;  %v1509_v20 = vld [vmem:[#allocation5 + $0xa8] ss:$16 sps:$4 sm:$0xff]  }
  0x5a   :  { %510 = vmatprep.subr.bf16.mxu1 %v1473_v21  ;;  %v74_v21 = vld [vmem:[#allocation2 + $0x60] sm:$0xff] }
  0x5b   :  { %1093 = vmatpush1.bf16.msra.mxu0 %v1559_v61 }
  0x5c   :  { %1094 = vmatprep.subr.bf16.mxu0 %v1560_v62 }
  0x5d   :  { %511 = vmatpush1.bf16.msra.mxu1 %v1475_v22  ;;  %v76_v22 = vld [vmem:[#allocation2 + $0x70] sm:$0xff] }
  0x5e   :  { %512 = vmatprep.subr.bf16.mxu1 %v1476_v23  ;;  %v1514_v23 = vld [vmem:[#allocation5 + $0xcc] ss:$16 sps:$4 sm:$0xff]  }
  0x5f   :  { %1095 = vmatpush1.bf16.msra.mxu0 %v1562_v2 }
  0x60   :  { %1096 = vmatprep.subr.bf16.mxu0 %v1563_v4 }
  0x61   :  { %513 = vmatpush1.bf16.msra.mxu1 %v1478_v24  ;;  %v1571_v24 = vld [vmem:[#allocation7 + $0x90] ss:$8 sps:$4 sm:$0xff]  }
  0x62   :  { %514 = vmatprep.subr.bf16.mxu1 %v1479_v25  ;;  %v1572_v25 = vld [vmem:[#allocation7 + $0xa4] ss:$8 sps:$4 sm:$0xff]  }
  0x63   :  { %1097 = vmatpush1.bf16.msra.mxu0 %v1565_v11 }
  0x64   :  { %1098 = vmatprep.subr.bf16.mxu0 %v1566_v12 }
  0x65   :  { %515 = vmatpush1.bf16.msra.mxu1 %v1481_v26  ;;  %v1840_v26 = vpack.c.bf16 %v76_v22, %v74_v21 }
  0x66   :  { %516 = vmatprep.subr.bf16.mxu1 %v1482_v27  ;;  %v1512_v27 = vld [vmem:[#allocation5 + $0xc8] ss:$16 sps:$4 sm:$0xff]  }
  0x67   :  { %1099 = vmatpush1.bf16.msra.mxu0 %v1568_v18 }
  0x68   :  { %1100 = vmatprep.subr.bf16.mxu0 %v1569_v19 }
  0x69   :  { %517 = vmatpush1.bf16.msra.mxu1 %v1484_v28  ;;  %v1517_v28 = vld [vmem:[#allocation5 + $0xec] ss:$16 sps:$4 sm:$0xff]  }
  0x6a   :  { %518 = vmatprep.subr.bf16.mxu1 %v1485_v29  ;;  %v1574_v29 = vld [vmem:[#allocation7 + $0xa0] ss:$8 sps:$4 sm:$0xff]  }
  0x6b   :  { %1101 = vmatpush1.bf16.msra.mxu0 %v1571_v24 }
  0x6c   :  { %1102 = vmatprep.subr.bf16.mxu0 %v1572_v25  ;;  %v1593_v25 = vld [vmem:[#allocation7 + $0x110] ss:$8 sps:$4 sm:$0xff]  }
  0x6d   :  { %519 = vmatpush1.bf16.msra.mxu1 %v1487_v32  ;;  %v1520_v32 = vld [vmem:[#allocation5 + $0x10c] ss:$16 sps:$4 sm:$0xff]  }
  0x6e   :  { %520 = vmatprep.subr.bf16.mxu1 %v1488_v34  ;;  %v1578_v34 = vld [vmem:[#allocation7 + $0xc4] ss:$8 sps:$4 sm:$0xff]  }
  0x6f   :  { %1103 = vmatpush1.bf16.msra.mxu0 %v1574_v29 }
  0x70   :  { %1104 = vmatprep.subr.bf16.mxu0 %v1575_v30 }
  0x71   :  { %521 = vmatpush1.bf16.msra.mxu1 %v1490_v37  ;;  %v1580_v37 = vld [vmem:[#allocation7 + $0xc0] ss:$8 sps:$4 sm:$0xff]  }
  0x72   :  { %522 = vmatprep.subr.bf16.mxu1 %v1491_v38  ;;  %v1581_v38 = vld [vmem:[#allocation7 + $0xd4] ss:$8 sps:$4 sm:$0xff]  }
  0x73   :  { %1105 = vmatpush1.bf16.msra.mxu0 %v1577_v33 }
  0x74   :  { %1106 = vmatprep.subr.bf16.mxu0 %v1578_v34 }
  0x75   :  { %523 = vmatpush1.bf16.msra.mxu1 %v1493_v41  ;;  %v1529_v41 = vld [vmem:[#allocation5 + $0x16c] ss:$16 sps:$4 sm:$0xff]  }
  0x76   :  { %565 = vmatprep.subr.bf16.mxu1 %v1496_v44  ;;  %v1530_v44 = vld [vmem:[#allocation5 + $0x188] ss:$16 sps:$4 sm:$0xff]  }
  0x77   :  { %1107 = vmatpush1.bf16.msra.mxu0 %v1580_v37 }
  0x78   :  { %525 = vmatmul.mubr.bf16.vlgmr.msra.gmra.mrb[0].mxu1 %v1822_v49  ;;  %1108 = vmatprep.subr.bf16.mxu0 %v1581_v38 }
  0x79   :  { %566 = vmatpush1.bf16.msra.mxu1 %v1494_v50  ;;  %534 = vmatprep.mubr.bf16.mxu1 %v1824_v52  ;;  %v1541_v50 = vld [vmem:[#allocation5 + $0x1ec] ss:$16 sps:$4 sm:$0xff]  }
  0x7a   :  { %567 = vmatprep.subr.bf16.mxu1 %v1499_v51  ;;  %v1539_v51 = vld [vmem:[#allocation5 + $0x1e8] ss:$16 sps:$4 sm:$0xff]  }
  0x7b   :  { %1109 = vmatpush1.bf16.msra.mxu0 %v1583_v53 }
  0x7d   :  { %568 = vmatpush1.bf16.msra.mxu1 %v1497_v54  ;;  %v1584_v54 = vld [vmem:[#allocation7 + $0xe4] ss:$8 sps:$4 sm:$0xff]  }
  0x7e   :  { %569 = vmatprep.subr.bf16.mxu1 %v1502_v58  ;;  %1110 = vmatprep.subr.bf16.mxu0 %v1584_v54  ;;  %v1851_v58 = vshrl.u32 %v152_v57, 7  ;;  %v1607_v54 = vld [vmem:[#allocation7 + $0x154] ss:$8 sps:$4 sm:$0xff]  }
  0x7f   :  { %1111 = vmatpush1.bf16.msra.mxu0 %v1586_v55 }
  0x80   :  { %535 = vmatmul.mubr.bf16.gmra.mrb[4].mxu1 %v1828_v1  ;;  %1112 = vmatprep.subr.bf16.mxu0 %v1587_v56  ;;  %v154_v59 = vsub.s32 0, %v1851_v58  ;;  %v158_v61 = vsub.s32 1, %v1851_v58 }
  0x81   :  { %570 = vmatpush1.bf16.msra.mxu1 %v1500_v63  ;;  %544 = vmatprep.mubr.bf16.mxu1 %v1830_v3 }
  0x82   :  { %571 = vmatprep.subr.bf16.mxu1 %v1505_v0  ;;  %v1863_v62 = vrot.slane %v1857_v60, %v154_v59  ;;  %v1868_v63 = vrot.slane %v1857_v60, %v158_v61 }
  0x85   :  { %572 = vmatpush1.bf16.msra.mxu1 %v1503_v5 }
  0x86   :  { %573 = vmatprep.subr.bf16.mxu1 %v1508_v8 }
  0x88   :  { %545 = vmatmul.mubr.bf16.gmra.mrb[8].mxu1 %v1834_v13 }
  0x89   :  { %574 = vmatpush1.bf16.msra.mxu1 %v1506_v14  ;;  %554 = vmatprep.mubr.bf16.mxu1 %v1836_v16  ;;  %v1590_v14 = vld [vmem:[#allocation7 + $0x100] ss:$8 sps:$4 sm:$0xff]  }
  0x8a   :  { %575 = vmatprep.subr.bf16.mxu1 %v1511_v17  ;;  %v1595_v17 = vld [vmem:[#allocation7 + $0x114] ss:$8 sps:$4 sm:$0xff]  }
  0x8d   :  { %576 = vmatpush1.bf16.msra.mxu1 %v1509_v20 }
  0x8e   :  { %577 = vmatprep.subr.bf16.mxu1 %v1514_v23 }
  0x90   :  { %555 = vmatmul.mubr.bf16.gmra.mrb[12].mxu1 %v1840_v26 }
  0x91   :  { %578 = vmatpush1.bf16.msra.mxu1 %v1512_v27  ;;  %597 = vmatprep.mubr.bf16.mxu1 %v1819_v15  ;;  %v1524_v15 = vld [vmem:[#allocation5 + $0x148] ss:$16 sps:$4 sm:$0xff]  }
  0x92   :  { %579 = vmatprep.subr.bf16.mxu1 %v1517_v28  ;;  %v1598_v28 = vld [vmem:[#allocation7 + $0x124] ss:$8 sps:$4 sm:$0xff]  }
  0x95   :  { %580 = vmatpush1.bf16.msra.mxu1 %v1515_v31 }
  0x96   :  { %581 = vmatprep.subr.bf16.mxu1 %v1520_v32  ;;  %v1596_v32 = vld [vmem:[#allocation7 + $0x120] ss:$8 sps:$4 sm:$0xff]  }
  0x99   :  { %582 = vmatpush1.bf16.msra.mxu1 %v1518_v35  ;;  %v1601_v35 = vld [vmem:[#allocation7 + $0x134] ss:$8 sps:$4 sm:$0xff]  }
  0x9a   :  { %583 = vmatprep.subr.bf16.mxu1 %v1523_v36 }
  0x9d   :  { %584 = vmatpush1.bf16.msra.mxu1 %v1521_v39 }
  0x9e   :  { %585 = vmatprep.subr.bf16.mxu1 %v1526_v40 }
  0xa1   :  { %586 = vmatpush1.bf16.msra.mxu1 %v1524_v15 }
  0xa2   :  { %587 = vmatprep.subr.bf16.mxu1 %v1529_v41 }
  0xa5   :  { %588 = vmatpush1.bf16.msra.mxu1 %v1527_v42  ;;  %v1599_v42 = vld [vmem:[#allocation7 + $0x130] ss:$8 sps:$4 sm:$0xff]  }
  0xa6   :  { %589 = vmatprep.subr.bf16.mxu1 %v1532_v43 }
  0xa9   :  { %590 = vmatpush1.bf16.msra.mxu1 %v1530_v44 }
  0xaa   :  { %591 = vmatprep.subr.bf16.mxu1 %v1535_v45  ;;  %v1604_v45 = vld [vmem:[#allocation7 + $0x144] ss:$8 sps:$4 sm:$0xff]  }
  0xad   :  { %592 = vmatpush1.bf16.msra.mxu1 %v1533_v46 }
  0xae   :  { %593 = vmatprep.subr.bf16.mxu1 %v1538_v47 }
  0xb1   :  { %594 = vmatpush1.bf16.msra.mxu1 %v1536_v48 }
  0xb2   :  { %595 = vmatprep.subr.bf16.mxu1 %v1541_v50  ;;  %v1602_v50 = vld [vmem:[#allocation7 + $0x140] ss:$8 sps:$4 sm:$0xff]  }
  0xb5   :  { %596 = vmatpush1.bf16.msra.mxu1 %v1539_v51 }
  0xb8   :  { %598 = vmatmul.mubr.bf16.vlgmr.msra.gmra.mrb[16].mxu1 %v1822_v49  ;;  %v1589_v49 = vld [vmem:[#allocation7 + $0xf0] ss:$8 sps:$4 sm:$0xff]  }
  0xb9   :  { %607 = vmatprep.mubr.bf16.mxu1 %v1824_v52  ;;  %1113 = vmatpush1.bf16.msra.mxu0 %v1589_v49  ;;  %v1592_v52 = vld [vmem:[#allocation7 + $0x104] ss:$8 sps:$4 sm:$0xff]  }
  0xba   :  { %1155 = vmatprep.subr.bf16.mxu0 %v1592_v52 }
  0xc0   :  { %608 = vmatmul.mubr.bf16.gmra.mrb[20].mxu1 %v1828_v1 }
  0xc1   :  { %617 = vmatprep.mubr.bf16.mxu1 %v1830_v3 }
  0xc8   :  { %618 = vmatmul.mubr.bf16.gmra.mrb[24].mxu1 %v1834_v13 }
  0xc9   :  { %627 = vmatprep.mubr.bf16.mxu1 %v1836_v16 }
  0xd0   :  { %628 = vmatmul.mubr.bf16.gmra.mrb[28].mxu1 %v1840_v26 }
 0x14b   :  { %v526_v0 = vpop.f32.mrb[0].mxu1 }
 0x14c   :  { %v527_v1 = vadd.f32 %v526_v0, %v1863_v62  ;;  %v528_v2 = vpop.f32.mrb[1].mxu1 }
 0x14d   :  { %v529_v3 = vadd.f32 %v528_v2, %v1868_v63  ;;  %v530_v4 = vpop.f32.mrb[2].mxu1  ;;  %v1605_v2 = vld [vmem:[#allocation7 + $0x150] ss:$8 sps:$4 sm:$0xff]  }
 0x14e   :  { %v638_v5 = vmax.f32 %v527_v1, 0.0  ;;  %v531_v6 = vadd.f32 %v530_v4, %v1863_v62  ;;  %v532_v7 = vpop.f32.mrb[3].mxu1 }
 0x14f   :  { %v533_v8 = vadd.f32 %v532_v7, %v1868_v63  ;;  %v639_v10 = vmax.f32 %v529_v3, 0.0 }
 0x150   :  { %v642_v9 = vmax.f32 %v531_v6, 0.0 }
 0x151   :  { %v643_v11 = vmax.f32 %v533_v8, 0.0 }
 0x152   :  { %v670_v12 = vpack.c.bf16 %v642_v9, %v638_v5  ;;  %v1610_v5 = vld [vmem:[#allocation7 + $0x164] ss:$8 sps:$4 sm:$0xff]   ;;  %v1608_v9 = vld [vmem:[#allocation7 + $0x160] ss:$8 sps:$4 sm:$0xff]  }
 0x153   :  { %v671_v13 = vpack.c.bf16 %v643_v11, %v639_v10  ;;  %v536_v16 = vpop.f32.mrb[4].mxu1  ;;  %v1613_v11 = vld [vmem:[#allocation7 + $0x174] ss:$8 sps:$4 sm:$0xff]  }
 0x154   :  { %v537_v18 = vadd.f32 %v536_v16, %v1863_v62  ;;  %v538_v19 = vpop.f32.mrb[5].mxu1  ;;  %v1622_v16 = vld [vmem:[#allocation7 + $0x1a4] ss:$8 sps:$4 sm:$0xff]  }
 0x155   :  { %1114 = vmatprep.mubr.bf16.mxu0 %v671_v13  ;;  %v539_v20 = vadd.f32 %v538_v19, %v1868_v63  ;;  %v540_v21 = vpop.f32.mrb[6].mxu1  ;;  %v1614_v13 = vld [vmem:[#allocation7 + $0x180] ss:$8 sps:$4 sm:$0xff]   ;;  %v1623_v19 = vld [vmem:[#allocation7 + $0x1b0] ss:$8 sps:$4 sm:$0xff]  }
 0x156   :  { %1115 = vmatmul.mubr.bf16.vlgmr.msra.gmra.mrb[0].mxu0 %v670_v12  ;;  %v646_v22 = vmax.f32 %v537_v18, 0.0  ;;  %v541_v23 = vadd.f32 %v540_v21, %v1863_v62  ;;  %v542_v24 = vpop.f32.mrb[7].mxu1  ;;  %v1616_v12 = vld [vmem:[#allocation7 + $0x184] ss:$8 sps:$4 sm:$0xff]   ;;  %v1625_v18 = vld [vmem:[#allocation7 + $0x1b4] ss:$8 sps:$4 sm:$0xff]  }
 0x157   :  { %1156 = vmatpush1.bf16.msra.mxu0 %v1590_v14  ;;  %v647_v26 = vmax.f32 %v539_v20, 0.0  ;;  %v543_v27 = vadd.f32 %v542_v24, %v1868_v63  ;;  %v1617_v14 = vld [vmem:[#allocation7 + $0x190] ss:$8 sps:$4 sm:$0xff]   ;;  %v1628_v20 = vld [vmem:[#allocation7 + $0x1c4] ss:$8 sps:$4 sm:$0xff]   ;;  %v166_v24 = vsub.s32 3, %v1851_v58 }
 0x158   :  { %1157 = vmatprep.subr.bf16.mxu0 %v1595_v17  ;;  %v650_v29 = vmax.f32 %v541_v23, 0.0  ;;  %v1620_v17 = vld [vmem:[#allocation7 + $0x1a0] ss:$8 sps:$4 sm:$0xff]   ;;  %v162_v23 = vsub.s32 2, %v1851_v58 }
 0x159   :  { %v651_v30 = vmax.f32 %v543_v27, 0.0  ;;  %v1626_v21 = vld [vmem:[#allocation7 + $0x1c0] ss:$8 sps:$4 sm:$0xff]   ;;  %v1634_v27 = vld [vmem:[#allocation7 + $0x1e4] ss:$8 sps:$4 sm:$0xff]  }
 0x15a   :  { %v674_v31 = vpack.c.bf16 %v650_v29, %v646_v22  ;;  %v1631_v22 = vld [vmem:[#allocation7 + $0x1d4] ss:$8 sps:$4 sm:$0xff]  }
 0x15b   :  { %1158 = vmatpush1.bf16.msra.mxu0 %v1593_v25  ;;  %v675_v33 = vpack.c.bf16 %v651_v30, %v647_v26  ;;  %v546_v34 = vpop.f32.mrb[8].mxu1  ;;  %v1629_v25 = vld [vmem:[#allocation7 + $0x1d0] ss:$8 sps:$4 sm:$0xff]   ;;  %v1889_v26 = vrot.slane %v1857_v60, %v162_v23  ;;  %v1632_v30 = vld [vmem:[#allocation7 + $0x1e0] ss:$8 sps:$4 sm:$0xff]  }
 0x15c   :  { %1159 = vmatprep.subr.bf16.mxu0 %v1598_v28  ;;  %v547_v36 = vadd.f32 %v546_v34, %v1863_v62  ;;  %v548_v37 = vpop.f32.mrb[9].mxu1  ;;  %v1892_v28 = vrot.slane %v1857_v60, %v166_v24 }
 0x15d   :  { %v549_v38 = vadd.f32 %v548_v37, %v1868_v63  ;;  %v550_v39 = vpop.f32.mrb[10].mxu1  ;;  %1124 = vmatprep.mubr.bf16.mxu0 %v675_v33  ;;  %v1637_v33 = vld [vmem:[#allocation7 + $0x1f4] ss:$8 sps:$4 sm:$0xff]  }
 0x15e   :  { %v654_v40 = vmax.f32 %v547_v36, 0.0  ;;  %v551_v15 = vadd.f32 %v550_v39, %v1863_v62  ;;  %v552_v41 = vpop.f32.mrb[11].mxu1  ;;  %1125 = vmatmul.mubr.bf16.gmra.mrb[4].mxu0 %v674_v31  ;;  %v1635_v39 = vld [vmem:[#allocation7 + $0x1f0] ss:$8 sps:$4 sm:$0xff]  }
 0x15f   :  { %1160 = vmatpush1.bf16.msra.mxu0 %v1596_v32  ;;  %v655_v43 = vmax.f32 %v549_v38, 0.0  ;;  %v553_v44 = vadd.f32 %v552_v41, %v1868_v63 }
 0x160   :  { %1161 = vmatprep.subr.bf16.mxu0 %v1601_v35  ;;  %v658_v46 = vmax.f32 %v551_v15, 0.0 }
 0x161   :  { %v659_v47 = vmax.f32 %v553_v44, 0.0 }
 0x162   :  { %v678_v48 = vpack.c.bf16 %v658_v46, %v654_v40 }
 0x163   :  { %1162 = vmatpush1.bf16.msra.mxu0 %v1599_v42  ;;  %v679_v51 = vpack.c.bf16 %v659_v47, %v655_v43  ;;  %v556_v53 = vpop.f32.mrb[12].mxu1 }
 0x164   :  { %1163 = vmatprep.subr.bf16.mxu0 %v1604_v45  ;;  %v557_v55 = vadd.f32 %v556_v53, %v1863_v62  ;;  %v558_v56 = vpop.f32.mrb[13].mxu1 }
 0x165   :  { %v559_v49 = vadd.f32 %v558_v56, %v1868_v63  ;;  %v560_v52 = vpop.f32.mrb[14].mxu1  ;;  %1134 = vmatprep.mubr.bf16.mxu0 %v679_v51 }
 0x166   :  { %v662_v57 = vmax.f32 %v557_v55, 0.0  ;;  %v561_v0 = vadd.f32 %v560_v52, %v1863_v62  ;;  %v562_v1 = vpop.f32.mrb[15].mxu1  ;;  %1135 = vmatmul.mubr.bf16.gmra.mrb[8].mxu0 %v678_v48  ;;  %v1611_v62 = vld [vmem:[#allocation7 + $0x170] ss:$8 sps:$4 sm:$0xff]  }
 0x167   :  { %1164 = vmatpush1.bf16.msra.mxu0 %v1602_v50  ;;  %v663_v3 = vmax.f32 %v559_v49, 0.0  ;;  %v563_v4 = vadd.f32 %v562_v1, %v1868_v63  ;;  %v1619_v63 = vld [vmem:[#allocation7 + $0x194] ss:$8 sps:$4 sm:$0xff]  }
 0x168   :  { %1165 = vmatprep.subr.bf16.mxu0 %v1607_v54  ;;  %v666_v6 = vmax.f32 %v561_v0, 0.0 }
 0x169   :  { %v667_v7 = vmax.f32 %v563_v4, 0.0 }
 0x16a   :  { %v682_v8 = vpack.c.bf16 %v666_v6, %v662_v57 }
 0x16b   :  { %1166 = vmatpush1.bf16.msra.mxu0 %v1605_v2  ;;  %v683_v10 = vpack.c.bf16 %v667_v7, %v663_v3 }
 0x16c   :  { %1167 = vmatprep.subr.bf16.mxu0 %v1610_v5 }
 0x16d   :  { %1144 = vmatprep.mubr.bf16.mxu0 %v683_v10 }
 0x16e   :  { %1145 = vmatmul.mubr.bf16.gmra.mrb[12].mxu0 %v682_v8 }
 0x16f   :  { %1168 = vmatpush1.bf16.msra.mxu0 %v1608_v9 }
 0x170   :  { %1169 = vmatprep.subr.bf16.mxu0 %v1613_v11 }
 0x173   :  { %1170 = vmatpush1.bf16.msra.mxu0 %v1611_v62 }
 0x174   :  { %1171 = vmatprep.subr.bf16.mxu0 %v1616_v12 }
 0x177   :  { %1172 = vmatpush1.bf16.msra.mxu0 %v1614_v13 }
 0x178   :  { %1173 = vmatprep.subr.bf16.mxu0 %v1619_v63 }
 0x17b   :  { %1174 = vmatpush1.bf16.msra.mxu0 %v1617_v14 }
 0x17c   :  { %1175 = vmatprep.subr.bf16.mxu0 %v1622_v16 }
 0x17f   :  { %1176 = vmatpush1.bf16.msra.mxu0 %v1620_v17 }
 0x180   :  { %1177 = vmatprep.subr.bf16.mxu0 %v1625_v18 }
 0x183   :  { %1178 = vmatpush1.bf16.msra.mxu0 %v1623_v19 }
 0x184   :  { %1179 = vmatprep.subr.bf16.mxu0 %v1628_v20 }
 0x187   :  { %1180 = vmatpush1.bf16.msra.mxu0 %v1626_v21 }
 0x188   :  { %1181 = vmatprep.subr.bf16.mxu0 %v1631_v22 }
 0x18b   :  { %v599_v29 = vpop.f32.mrb[16].mxu1  ;;  %1182 = vmatpush1.bf16.msra.mxu0 %v1629_v25 }
 0x18c   :  { %v600_v31 = vadd.f32 %v599_v29, %v1889_v26  ;;  %v601_v32 = vpop.f32.mrb[17].mxu1  ;;  %1183 = vmatprep.subr.bf16.mxu0 %v1634_v27  ;;  %v750_v29 = vld [vmem:[%s1936_s4] sm:$0x3]  ;;  %s1739_s4 = smov [#allocation8]  }
 0x18d   :  { %v602_v34 = vadd.f32 %v601_v32, %v1892_v28  ;;  %v603_v35 = vpop.f32.mrb[18].mxu1  ;;  %s1265_s10 = sshll.u32 %s1739_s4, 4  ;;  %s1266_s10 = int_to_ptr.vmem [resolvable:$true] %s1265_s10 }
 0x18e   :  { %v604_v36 = vadd.f32 %v603_v35, %v1889_v26  ;;  %v605_v37 = vpop.f32.mrb[19].mxu1  ;;  %v640_v60 = vmax.f32 %v600_v31, 0.0  ;;  %s1704_s11 = scalar_lea.vmem %s1266_s10, 2048  ;;  %p1709_p11 = scmp.lt.s32.totalorder %s1266_s10, %s1266_s10 }
 0x18f   :  { %v606_v38 = vadd.f32 %v605_v37, %v1892_v28  ;;  %1184 = vmatpush1.bf16.msra.mxu0 %v1632_v30  ;;  %v641_v15 = vmax.f32 %v602_v34, 0.0  ;;  %v755_v30 = vrot.slane %v750_v29, %v154_v59  ;;  %p1705_p10 = scmp.ne.s32.totalorder %s1266_s10, %s1704_s11  ;;  %p1710_p12 = scmp.lt.s32.totalorder %s1704_s11, %s1704_s11 }
 0x190   :  { %v644_v40 = vmax.f32 %v604_v36, 0.0  ;;  %1185 = vmatprep.subr.bf16.mxu0 %v1637_v33 }
 0x191   :  { %v645_v41 = vmax.f32 %v606_v38, 0.0  ;;  %p1711_p13 = por %p1710_p12, %p1709_p11 }
 0x192   :  { %v672_v42 = vpack.c.bf16 %v644_v40, %v640_v60 }
 0x193   :  { %v673_v43 = vpack.c.bf16 %v645_v41, %v641_v15  ;;  %v609_v44 = vpop.f32.mrb[20].mxu1  ;;  %1186 = vmatpush1.bf16.msra.mxu0 %v1635_v39  ;;  %p1712_p0 = pnand %p1711_p13, %p1705_p10 }
 0x194   :  { %v610_v45 = vadd.f32 %v609_v44, %v1889_v26  ;;  %v611_v46 = vpop.f32.mrb[21].mxu1 }
 0x195   :  { %v612_v47 = vadd.f32 %v611_v46, %v1892_v28  ;;  %v613_v48 = vpop.f32.mrb[22].mxu1  ;;  %1187 = vmatprep.mubr.bf16.mxu0 %v673_v43 }
 0x196   :  { %v614_v50 = vadd.f32 %v613_v48, %v1889_v26  ;;  %v615_v51 = vpop.f32.mrb[23].mxu1  ;;  %1188 = vmatmul.mubr.bf16.vlgmr.msra.gmra.mrb[0].mxu0 %v672_v42  ;;  %v648_v54 = vmax.f32 %v610_v45, 0.0 }
 0x197   :  { %v616_v53 = vadd.f32 %v615_v51, %v1892_v28  ;;  %v649_v56 = vmax.f32 %v612_v47, 0.0 }
 0x198   :  { %v652_v55 = vmax.f32 %v614_v50, 0.0 }
 0x199   :  { %v653_v49 = vmax.f32 %v616_v53, 0.0 }
 0x19a   :  { %v676_v52 = vpack.c.bf16 %v652_v55, %v648_v54 }
 0x19b   :  { %v677_v57 = vpack.c.bf16 %v653_v49, %v649_v56  ;;  %v619_v0 = vpop.f32.mrb[24].mxu1 }
 0x19c   :  { %v620_v1 = vadd.f32 %v619_v0, %v1889_v26  ;;  %v621_v2 = vpop.f32.mrb[25].mxu1 }
 0x19d   :  { %v622_v3 = vadd.f32 %v621_v2, %v1892_v28  ;;  %v623_v4 = vpop.f32.mrb[26].mxu1  ;;  %1197 = vmatprep.mubr.bf16.mxu0 %v677_v57 }
 0x19e   :  { %v624_v5 = vadd.f32 %v623_v4, %v1889_v26  ;;  %v625_v6 = vpop.f32.mrb[27].mxu1  ;;  %1198 = vmatmul.mubr.bf16.gmra.mrb[4].mxu0 %v676_v52  ;;  %v656_v8 = vmax.f32 %v620_v1, 0.0 }
 0x19f   :  { %v626_v7 = vadd.f32 %v625_v6, %v1892_v28  ;;  %v657_v10 = vmax.f32 %v622_v3, 0.0 }
 0x1a0   :  { %v660_v9 = vmax.f32 %v624_v5, 0.0 }
 0x1a1   :  { %v661_v11 = vmax.f32 %v626_v7, 0.0 }
 0x1a2   :  { %v680_v62 = vpack.c.bf16 %v660_v9, %v656_v8 }
 0x1a3   :  { %v681_v12 = vpack.c.bf16 %v661_v11, %v657_v10  ;;  %v629_v13 = vpop.f32.mrb[28].mxu1 }
 0x1a4   :  { %v630_v63 = vadd.f32 %v629_v13, %v1889_v26  ;;  %v631_v14 = vpop.f32.mrb[29].mxu1 }
 0x1a5   :  { %v632_v16 = vadd.f32 %v631_v14, %v1892_v28  ;;  %v633_v17 = vpop.f32.mrb[30].mxu1  ;;  %1207 = vmatprep.mubr.bf16.mxu0 %v681_v12 }
 0x1a6   :  { %v634_v18 = vadd.f32 %v633_v17, %v1889_v26  ;;  %v635_v19 = vpop.f32.mrb[31].mxu1  ;;  %1208 = vmatmul.mubr.bf16.gmra.mrb[8].mxu0 %v680_v62  ;;  %v664_v21 = vmax.f32 %v630_v63, 0.0  ;;  %v759_v26 = vrot.slane %v750_v29, %v158_v61 }
 0x1a7   :  { %v636_v20 = vadd.f32 %v635_v19, %v1892_v28  ;;  %v665_v23 = vmax.f32 %v632_v16, 0.0 }
 0x1a8   :  { %v668_v22 = vmax.f32 %v634_v18, 0.0 }
 0x1a9   :  { %v669_v24 = vmax.f32 %v636_v20, 0.0 }
 0x1aa   :  { %v684_v25 = vpack.c.bf16 %v668_v22, %v664_v21 }
 0x1ab   :  { %v685_v27 = vpack.c.bf16 %v669_v24, %v665_v23 }
 0x1ad   :  { %1217 = vmatprep.mubr.bf16.mxu0 %v685_v27 }
 0x1ae   :  { %1218 = vmatmul.mubr.bf16.gmra.mrb[12].mxu0 %v684_v25 }
 0x269   :  { %v1189_v31 = vpop.f32.mrb[0].mxu0 }
 0x26a   :  { %v1406_v28 = vadd.f32 %v1189_v31, %v755_v30  ;;  %v1191_v32 = vpop.f32.mrb[1].mxu0 }
 0x26b   :  { %v1407_v33 = vadd.f32 %v1191_v32, %v759_v26  ;;  %v1193_v34 = vpop.f32.mrb[2].mxu0 }
 0x26c   :  { %v1228_v35 = vmax.f32 %v1406_v28, 0.0  ;;  %v1408_v36 = vadd.f32 %v1193_v34, %v755_v30  ;;  %v1195_v37 = vpop.f32.mrb[3].mxu0 }
 0x26d   :  { %v1229_v38 = vmax.f32 %v1407_v33, 0.0  ;;  %v1409_v39 = vadd.f32 %v1195_v37, %v759_v26 }
 0x26e   :  { %1244 = vst [vmem:[#allocation8] sm:$0xff] %v1228_v35  ;;  %v1230_v60 = vmax.f32 %v1408_v36, 0.0 }
 0x26f   :  { %1245 = vst [vmem:[#allocation8 + $0x8] sm:$0xff] %v1229_v38  ;;  %v1231_v40 = vmax.f32 %v1409_v39, 0.0 }
 0x270   :  { %1246 = vst [vmem:[#allocation8 + $0x10] sm:$0xff] %v1230_v60 }
 0x271   :  { %1247 = vst [vmem:[#allocation8 + $0x18] sm:$0xff] %v1231_v40  ;;  %v1199_v59 = vpop.f32.mrb[4].mxu0 }
 0x272   :  { %v1410_v15 = vadd.f32 %v1199_v59, %v755_v30  ;;  %v1201_v58 = vpop.f32.mrb[5].mxu0 }
 0x273   :  { %v1411_v61 = vadd.f32 %v1201_v58, %v759_v26  ;;  %v1203_v41 = vpop.f32.mrb[6].mxu0 }
 0x274   :  { %v1232_v42 = vmax.f32 %v1410_v15, 0.0  ;;  %v1412_v43 = vadd.f32 %v1203_v41, %v755_v30  ;;  %v1205_v44 = vpop.f32.mrb[7].mxu0 }
 0x275   :  { %v1233_v45 = vmax.f32 %v1411_v61, 0.0  ;;  %v1413_v46 = vadd.f32 %v1205_v44, %v759_v26 }
 0x276   :  { %1248 = vst [vmem:[#allocation8 + $0x20] sm:$0xff] %v1232_v42  ;;  %v1234_v47 = vmax.f32 %v1412_v43, 0.0 }
 0x277   :  { %1249 = vst [vmem:[#allocation8 + $0x28] sm:$0xff] %v1233_v45  ;;  %v1235_v48 = vmax.f32 %v1413_v46, 0.0 }
 0x278   :  { %1250 = vst [vmem:[#allocation8 + $0x30] sm:$0xff] %v1234_v47 }
 0x279   :  { %1251 = vst [vmem:[#allocation8 + $0x38] sm:$0xff] %v1235_v48  ;;  %v1209_v50 = vpop.f32.mrb[8].mxu0 }
 0x27a   :  { %v1414_v51 = vadd.f32 %v1209_v50, %v755_v30  ;;  %v1211_v53 = vpop.f32.mrb[9].mxu0 }
 0x27b   :  { %v1415_v54 = vadd.f32 %v1211_v53, %v759_v26  ;;  %v1213_v55 = vpop.f32.mrb[10].mxu0 }
 0x27c   :  { %v1236_v56 = vmax.f32 %v1414_v51, 0.0  ;;  %v1416_v49 = vadd.f32 %v1213_v55, %v755_v30  ;;  %v1215_v52 = vpop.f32.mrb[11].mxu0 }
 0x27d   :  { %v1237_v57 = vmax.f32 %v1415_v54, 0.0  ;;  %v1417_v0 = vadd.f32 %v1215_v52, %v759_v26 }
 0x27e   :  { %1252 = vst [vmem:[#allocation8 + $0x40] sm:$0xff] %v1236_v56  ;;  %v1238_v1 = vmax.f32 %v1416_v49, 0.0 }
 0x27f   :  { %1253 = vst [vmem:[#allocation8 + $0x48] sm:$0xff] %v1237_v57  ;;  %v1239_v2 = vmax.f32 %v1417_v0, 0.0 }
 0x280   :  { %1254 = vst [vmem:[#allocation8 + $0x50] sm:$0xff] %v1238_v1 }
 0x281   :  { %1255 = vst [vmem:[#allocation8 + $0x58] sm:$0xff] %v1239_v2  ;;  %v1219_v3 = vpop.f32.mrb[12].mxu0 }
 0x282   :  { %v1418_v4 = vadd.f32 %v1219_v3, %v755_v30  ;;  %v1221_v5 = vpop.f32.mrb[13].mxu0 }
 0x283   :  { %v1419_v6 = vadd.f32 %v1221_v5, %v759_v26  ;;  %v1223_v7 = vpop.f32.mrb[14].mxu0 }
 0x284   :  { %v1240_v8 = vmax.f32 %v1418_v4, 0.0  ;;  %v1420_v9 = vadd.f32 %v1223_v7, %v755_v30  ;;  %v1225_v10 = vpop.f32.mrb[15].mxu0 }
 0x285   :  { %v1241_v11 = vmax.f32 %v1419_v6, 0.0  ;;  %v1421_v62 = vadd.f32 %v1225_v10, %v759_v26 }
 0x286   :  { %1256 = vst [vmem:[#allocation8 + $0x60] sm:$0xff] %v1240_v8  ;;  %v1242_v12 = vmax.f32 %v1420_v9, 0.0 }
 0x287   :  { %1257 = vst [vmem:[#allocation8 + $0x68] sm:$0xff] %v1241_v11  ;;  %v1243_v13 = vmax.f32 %v1421_v62, 0.0 }
 0x288   :  { %1258 = vst [vmem:[#allocation8 + $0x70] sm:$0xff] %v1242_v12 }
 0x289   :  { %1259 = vst [vmem:[#allocation8 + $0x78] sm:$0xff] %v1243_v13 }
 0x28a   :  { %1715 = shalt.err (!%p1712_p0)
}
 0x28b   :  { %s1716_s14 = scalar_lea.hbm %s1937_s5, 2048 }
 0x28c   :  { %p1717_p1 = scmp.ne.s32.totalorder %s1937_s5, %s1716_s14  ;;  %p1720_p2 = scmp.lt.u32.totalorder %s1716_s14, %s1937_s5 }
 0x28e   :  { %p1722_p3 = pnand %p1720_p2, %p1717_p1 }
 0x290   :  { %1725 = shalt.err (!%p1722_p3)
}
 0x291   :  { %1271 = dma.vmem_to_hbm [thread:$0]  %s1266_s10, 2048, %s1937_s5, [#allocation4], %s1734_s30, %s1734_s30, %s1735_s6  }
 0x292   :  { %1730 = dma.done.wait [#allocation4], 2048  }
 0x293   :  { %1731 = vsyncadd [#allocation4], 4294965248 }
 0x294   :  { %1275 = vsyncpa [#allocation3], 1 }
 0x295   :  { %1276 = vsyncpa [#allocation6], 1 }
 0x296   :  { %1277 = vsyncpa [#allocation4], 1 }

</bundles_post_ra>
